<compile_context>
chip_gen: v7x
topology: tpu7x:2x2x1
jax: 0.10.0
libtpu: 0.0.40
codegen_flags: <defaults>
</compile_context>

<pallas_src>
import functools

import jax
import jax.numpy as jnp
from jax import lax
from jax.experimental import pallas as pl
from jax.experimental.pallas import tpu as pltpu

LANE = 128
SUBLANE = 8
TILE = 512            # square tile (rows and cols) of the pairwise matrix, max-margin path
TR_MAX = 256          # row tile, weighted-mean path
TC_MAX = 1024         # lane (column) tile, weighted-mean path (keep >= 512 for HBM roofline)
LARGE = 1e30          # padding sentinel: relu(...) == 0 for padded rows/cols


def _round_up(x, m):
    return ((x + m - 1) // m) * m


def _cdiv(a, b):
    return (a + b - 1) // b


# ---------------------------------------------------------------------------
# Pallas kernels
# ---------------------------------------------------------------------------
def _max_margin_kernel(si_ref, sj_ref, mask_ref, o_ref, *, t, n_pad):
    """Per-row-tile partial sums of relu((s[i]+c) - s[j]) over the strict upper
    triangle.  Below-diagonal column tiles are never visited."""
    it = pl.program_id(0)
    n_col_tiles = n_pad // t
    n_groups = t // LANE

    # (t, 1) column of s+c (padding -LARGE); hoist the lane broadcast out of the loops.
    si_b = jnp.broadcast_to(si_ref[...], (t, LANE))

    def tile_groups(col0, acc, use_mask):
        sj_tile = sj_ref[:, pl.ds(col0, t)]                      # (1, t): one dynamic slice
        for g in range(n_groups):                                # static unroll
            sj_g = sj_tile[:, g * LANE:(g + 1) * LANE]           # (1, 128) sublane-broadcast
            d = si_b - sj_g                                      # (t, 128), VPU only
            if use_mask:
                d = d + mask_ref[:, g * LANE:(g + 1) * LANE]     # additive 0/-LARGE mask
            relu = jnp.maximum(d, 0.0)
            # (t,128) -> (t//8, 8, 128) is a pure vreg regrouping; sum(axis=0) is VALU adds.
            acc = acc + relu.reshape(t // SUBLANE, SUBLANE, LANE).sum(axis=0)
        return acc

    acc = jnp.zeros((SUBLANE, LANE), jnp.float32)

    # Diagonal tile (column-tile index == row-tile index): strict-upper mask applied.
    diag0 = pl.multiple_of(it * t, LANE)
    acc = tile_groups(diag0, acc, True)

    # Interior tiles (strictly above the diagonal tile): no mask at all.
    def interior(jt, a):
        return tile_groups(pl.multiple_of(jt * t, LANE), a, False)

    acc = lax.fori_loop(it + 1, n_col_tiles, interior, acc)

    o_ref[0] = acc                                               # lane-dense (8,128) partial


def _weighted_mean_kernel(s_ref, u_ref, o_ref, acc_ref, *, tr, tc, rows, n):
    """Partial sums of s * u.  s is read unpadded; edge tiles are masked in-kernel
    (never trust out-of-bounds block contents)."""
    it = pl.program_id(0)
    jt = pl.program_id(1)
    last_i = pl.num_programs(0) - 1
    last_j = pl.num_programs(1) - 1

    @pl.when(jt == 0)
    def _init():
        acc_ref[...] = jnp.zeros_like(acc_ref)

    def tile_partial(masked):
        part = jnp.zeros((SUBLANE, LANE), jnp.float32)
        if masked:
            row_ok = lax.broadcasted_iota(jnp.int32, (tr, LANE), 0) < (rows - it * tr)
        for g in range(tc // LANE):                               # static unroll
            sl = slice(g * LANE, (g + 1) * LANE)
            x = s_ref[:, sl] * u_ref[:, sl]                       # (tr,128) * (1,128)
            if masked:
                col_ok = (jt * tc + g * LANE
                          + lax.broadcasted_iota(jnp.int32, (tr, LANE), 1)) < n
                x = jnp.where(jnp.logical_and(row_ok, col_ok), x, 0.0)
            part = part + x.reshape(tr // SUBLANE, SUBLANE, LANE).sum(axis=0)
        return part

    row_edge = (rows % tr) != 0                                   # static Python bools
    col_edge = (n % tc) != 0
    need_mask = jnp.logical_or(jnp.logical_and(it == last_i, row_edge),
                               jnp.logical_and(jt == last_j, col_edge))

    @pl.when(need_mask)
    def _edge():
        acc_ref[...] += tile_partial(True)

    @pl.when(jnp.logical_not(need_mask))
    def _interior():
        acc_ref[...] += tile_partial(False)

    @pl.when(jt == last_j)
    def _flush():
        o_ref[0] = acc_ref[...]


# ---------------------------------------------------------------------------
# Wrapper (parameter / glue code in plain JAX)
# ---------------------------------------------------------------------------
def _build_w(n, perm=None):
    # w[i,j] = -1 for j>i, (n-1-i) on the diagonal, 0 below.  (reference only)
    w = jnp.triu(jnp.full((n, n), -1.0, dtype=jnp.float32), k=0)
    idx = jnp.arange(n)
    w = w.at[idx, idx].set(jnp.arange(n - 1, -1, -1, dtype=jnp.float32))
    if perm is not None:
        w = w[perm, :][:, perm]
    return w


def single_score_objective(s, perm=None, *, use_max_margin=True, c=0.5):
    s = jnp.asarray(s, jnp.float32)
    n = s.shape[-1]

    if use_max_margin:
        sv = jnp.squeeze(s)
        if sv.ndim == 0:
            sv = sv.reshape(1)
        if sv.ndim != 1:
            raise ValueError(
                f"max-margin path expects a single score vector, got shape {s.shape}")
        if perm is not None:
            sv = sv[jnp.asarray(perm, jnp.int32)]

        t = min(TILE, _round_up(n, LANE))        # square tile, multiple of 128
        n_pad = _round_up(n, t)
        num_tiles = n_pad // t

        # Column copy (varies with row i): margin c folded in, -LARGE padding.
        s_i = jnp.full((n_pad, 1), -LARGE, jnp.float32).at[:n, 0].set(sv + c)
        # Row copy (varies with col j): +LARGE padding so relu kills padded columns.
        s_j = jnp.full((1, n_pad), LARGE, jnp.float32).at[0, :n].set(sv)
        # Additive strict-upper-triangle mask in tile-local coordinates (square tiles
        # => only the jt==it tile straddles the diagonal and the mask is grid-invariant).
        r = jnp.arange(t)
        diag_mask = jnp.where(r[None, :] > r[:, None], 0.0, -LARGE).astype(jnp.float32)

        kernel = functools.partial(_max_margin_kernel, t=t, n_pad=n_pad)
        partials = pl.pallas_call(
            kernel,
            grid=(num_tiles,),
            in_specs=[
                pl.BlockSpec((t, 1), lambda i: (i, 0)),
                pl.BlockSpec((1, n_pad), lambda i: (0, 0)),     # resident full score row
                pl.BlockSpec((t, t), lambda i: (0, 0)),         # resident diagonal mask
            ],
            out_specs=pl.BlockSpec((1, SUBLANE, LANE), lambda i: (i, 0, 0)),
            out_shape=jax.ShapeDtypeStruct((num_tiles, SUBLANE, LANE), jnp.float32),
            compiler_params=pltpu.CompilerParams(
                dimension_semantics=("parallel",)),
        )(s_i, s_j, diag_mask)
        # Padded rows/cols and masked entries contribute exactly 0, so this is exact.
        return jnp.sum(partials) * (1.0 / float(n * n))
    else:
        s2 = s.reshape(-1, n)
        rows = s2.shape[0]
        idx = (jnp.asarray(perm, jnp.int32) if perm is not None
               else jnp.arange(n, dtype=jnp.int32))
        # Column sums of the permuted weight matrix, closed form: n - 1 - 2*perm[j].
        u = (n - 1 - 2 * idx).astype(jnp.float32)

        tr = min(TR_MAX, _round_up(rows, SUBLANE))
        tc = min(TC_MAX, _round_up(n, LANE))
        r_tiles = _cdiv(rows, tr)
        c_tiles = _cdiv(n, tc)

        # Only the tiny weight row is padded; s itself is read unpadded from HBM
        # (edge tiles are masked in-kernel), so no extra write+read of the score matrix.
        u_pad = jnp.zeros((1, c_tiles * tc), jnp.float32).at[0, :n].set(u)

        kernel = functools.partial(_weighted_mean_kernel, tr=tr, tc=tc, rows=rows, n=n)
        partials = pl.pallas_call(
            kernel,
            grid=(r_tiles, c_tiles),
            in_specs=[
                pl.BlockSpec((tr, tc), lambda i, j: (i, j)),
                pl.BlockSpec((1, tc), lambda i, j: (0, j)),
            ],
            out_specs=pl.BlockSpec((1, SUBLANE, LANE), lambda i, j: (i, 0, 0)),
            out_shape=jax.ShapeDtypeStruct((r_tiles, SUBLANE, LANE), jnp.float32),
            scratch_shapes=[pltpu.VMEM((SUBLANE, LANE), jnp.float32)],
            compiler_params=pltpu.CompilerParams(
                dimension_semantics=("parallel", "arbitrary")),
        )(s2, u_pad)
        return jnp.sum(partials) * (1.0 / float(rows * n))


# ---------------------------------------------------------------------------
# Pure-JAX reference (mirrors the PyTorch forward exactly)
# ---------------------------------------------------------------------------
def _reference(s, perm=None, *, use_max_margin=True, c=0.5):
    s = jnp.asarray(s, jnp.float32)
    n = s.shape[-1]
    w = _build_w(n, perm)
    if use_max_margin:
        sv = jnp.squeeze(s)
        if perm is not None:
            sv = sv[perm]
        sv = sv[None, :]
        si = jnp.tile(sv, (n, 1))
        sj = jnp.tile(sv.T, (1, n))
        sij = sj - si + c
        return jnp.mean(jnp.maximum(jnp.triu(sij, k=1), 0.0))
    else:
        return jnp.mean(s @ w.T)


if __name__ == "__main__":
    key = jax.random.PRNGKey(0)

    # --- small shapes matching probe usage: scores of shape (1, 8) ---
    n = 8
    s = jax.random.normal(key, (1, n), dtype=jnp.float32)
    perm = jnp.array([3, 1, 0, 2, 7, 5, 4, 6], dtype=jnp.int32)

    out_mm = jax.block_until_ready(single_score_objective(s, c=0.5))
    ref_mm = _reference(s, c=0.5)
    assert jnp.allclose(out_mm, ref_mm, atol=1e-5, rtol=1e-5), (out_mm, ref_mm)

    out_mm_p = jax.block_until_ready(single_score_objective(s, perm, c=0.5))
    ref_mm_p = _reference(s, perm, c=0.5)
    assert jnp.allclose(out_mm_p, ref_mm_p, atol=1e-5, rtol=1e-5), (out_mm_p, ref_mm_p)

    out_w = jax.block_until_ready(
        single_score_objective(s, perm, use_max_margin=False, c=0.5))
    ref_w = _reference(s, perm, use_max_margin=False, c=0.5)
    assert jnp.allclose(out_w, ref_w, atol=1e-4, rtol=1e-4), (out_w, ref_w)

    # --- medium shape to exercise multi-row-tile grid, diagonal mask, interior
    #     fori_loop tiles, and in-kernel edge masking on the weighted path ---
    n2 = 600
    k1, k2 = jax.random.split(key)
    s2 = jax.random.normal(k1, (1, n2), dtype=jnp.float32)
    perm2 = jax.random.permutation(k2, n2).astype(jnp.int32)

    out2 = jax.block_until_ready(single_score_objective(s2, perm2, c=0.25))
    ref2 = _reference(s2, perm2, c=0.25)
    assert jnp.allclose(out2, ref2, atol=1e-3, rtol=1e-3), (out2, ref2)

    s3 = jax.random.normal(k2, (3, n2), dtype=jnp.float32)
    out3 = jax.block_until_ready(
        single_score_objective(s3, perm2, use_max_margin=False, c=0.25))
    ref3 = _reference(s3, perm2, use_max_margin=False, c=0.25)
    assert jnp.allclose(out3, ref3, atol=1e-3, rtol=1e-3), (out3, ref3)

    print("KERNEL_OK")
</pallas_src>

<mosaic_0001>
module attributes {stable_mosaic.version = 11 : i64} {
  func.func @_max_margin_kernel(%arg0: i32, %arg1: memref<128x1xf32, #tpu.memory_space<vmem>>, %arg2: memref<1x128xf32, #tpu.memory_space<vmem>>, %arg3: memref<128x128xf32, #tpu.memory_space<vmem>>, %arg4: memref<1x8x128xf32, #tpu.memory_space<vmem>>) attributes {dimension_semantics = [#tpu.dimension_semantics<parallel>], iteration_bounds = array<i64: 1>, scalar_prefetch = 0 : i64, scratch_operands = 0 : i64, tpu.core_type = #tpu.core_type<tc>, window_params = [{transform_indices = @transform_0, window_bounds = array<i64: 128, 1>}, {pipeline_mode = #tpu.pipeline_mode<synchronous>, transform_indices = @transform_1, window_bounds = array<i64: 1, 128>}, {pipeline_mode = #tpu.pipeline_mode<synchronous>, transform_indices = @transform_2, window_bounds = array<i64: 128, 128>}, {transform_indices = @transform_3, window_bounds = array<i64: 1, 8, 128>}]} {
    %c0 = arith.constant 0 : index
    %c0_0 = arith.constant 0 : index
    %0 = vector.load %arg1[%c0, %c0_0] : memref<128x1xf32, #tpu.memory_space<vmem>>, vector<128x1xf32>
    %1 = vector.shape_cast %0 : vector<128x1xf32> to vector<128x1xf32>
    %2 = vector.broadcast %1 : vector<128x1xf32> to vector<128x128xf32>
    %cst = arith.constant 0.000000e+00 : f32
    %3 = vector.broadcast %cst : f32 to vector<8x128xf32>
    %c128_i32 = arith.constant 128 : i32
    %4 = arith.muli %arg0, %c128_i32 : i32
    %5 = tpu.assume_multiple %4, 128 : i32
    %c0_1 = arith.constant 0 : index
    %6 = arith.index_cast %5 : i32 to index
    %7 = vector.load %arg2[%c0_1, %6] : memref<1x128xf32, #tpu.memory_space<vmem>>, vector<1x128xf32>
    %8 = vector.broadcast %7 : vector<1x128xf32> to vector<128x128xf32>
    %9 = arith.subf %2, %8 : vector<128x128xf32>
    %c0_2 = arith.constant 0 : index
    %c0_3 = arith.constant 0 : index
    %10 = vector.load %arg3[%c0_2, %c0_3] : memref<128x128xf32, #tpu.memory_space<vmem>>, vector<128x128xf32>
    %11 = arith.addf %9, %10 : vector<128x128xf32>
    %cst_4 = arith.constant 0.000000e+00 : f32
    %12 = vector.broadcast %cst_4 : f32 to vector<128x128xf32>
    %13 = arith.maximumf %11, %12 : vector<128x128xf32>
    %14 = vector.shape_cast %13 : vector<128x128xf32> to vector<16x8x128xf32>
    %cst_5 = arith.constant dense<0.000000e+00> : vector<8x128xf32>
    %15 = vector.multi_reduction <add>, %14, %cst_5 [0] : vector<16x8x128xf32> to vector<8x128xf32>
    %16 = arith.addf %3, %15 : vector<8x128xf32>
    %c1_i32 = arith.constant 1 : i32
    %17 = arith.addi %arg0, %c1_i32 : i32
    %c1_i32_6 = arith.constant 1 : i32
    %18 = arith.subi %c1_i32_6, %17 : i32
    %19 = arith.addi %17, %18 : i32
    %c1_i32_7 = arith.constant 1 : i32
    %20 = scf.for %arg5 = %17 to %19 step %c1_i32_7 iter_args(%arg6 = %16) -> (vector<8x128xf32>)  : i32 {
      %c128_i32_11 = arith.constant 128 : i32
      %24 = arith.muli %arg5, %c128_i32_11 : i32
      %25 = tpu.assume_multiple %24, 128 : i32
      %c0_12 = arith.constant 0 : index
      %26 = arith.index_cast %25 : i32 to index
      %27 = vector.load %arg2[%c0_12, %26] : memref<1x128xf32, #tpu.memory_space<vmem>>, vector<1x128xf32>
      %28 = vector.broadcast %27 : vector<1x128xf32> to vector<128x128xf32>
      %29 = arith.subf %2, %28 : vector<128x128xf32>
      %cst_13 = arith.constant 0.000000e+00 : f32
      %30 = vector.broadcast %cst_13 : f32 to vector<128x128xf32>
      %31 = arith.maximumf %29, %30 : vector<128x128xf32>
      %32 = vector.shape_cast %31 : vector<128x128xf32> to vector<16x8x128xf32>
      %cst_14 = arith.constant dense<0.000000e+00> : vector<8x128xf32>
      %33 = vector.multi_reduction <add>, %32, %cst_14 [0] : vector<16x8x128xf32> to vector<8x128xf32>
      %34 = arith.addf %arg6, %33 : vector<8x128xf32>
      scf.yield %34 : vector<8x128xf32>
    }
    %c0_8 = arith.constant 0 : index
    %c0_9 = arith.constant 0 : index
    %c0_10 = arith.constant 0 : index
    %21 = vector.load %arg4[%c0_8, %c0_9, %c0_10] : memref<1x8x128xf32, #tpu.memory_space<vmem>>, vector<1x8x128xf32>
    %22 = vector.shape_cast %21 : vector<1x8x128xf32> to vector<8x128xf32>
    %23 = vector.shape_cast %20 : vector<8x128xf32> to vector<1x8x128xf32>
    tpu.vector_store %arg4[%c0_8, %c0_9, %c0_10], %23 {strides = array<i32>} : memref<1x8x128xf32, #tpu.memory_space<vmem>>, vector<1x8x128xf32>,
    return
  }
  func.func @transform_0(%arg0: i32) -> (i32, i32) {
    %c0_i32 = arith.constant 0 : i32
    %c0_i32_0 = arith.constant 0 : i32
    return %arg0, %c0_i32 : i32, i32
  }
  func.func @transform_1(%arg0: i32) -> (i32, i32) {
    %c0_i32 = arith.constant 0 : i32
    %c0_i32_0 = arith.constant 0 : i32
    %c0_i32_1 = arith.constant 0 : i32
    return %c0_i32, %c0_i32_0 : i32, i32
  }
  func.func @transform_2(%arg0: i32) -> (i32, i32) {
    %c0_i32 = arith.constant 0 : i32
    %c0_i32_0 = arith.constant 0 : i32
    %c0_i32_1 = arith.constant 0 : i32
    return %c0_i32, %c0_i32_0 : i32, i32
  }
  func.func @transform_3(%arg0: i32) -> (i32, i32, i32) {
    %c0_i32 = arith.constant 0 : i32
    %c0_i32_0 = arith.constant 0 : i32
    %c0_i32_1 = arith.constant 0 : i32
    return %arg0, %c0_i32, %c0_i32_0 : i32, i32, i32
  }
}

</mosaic_0001>

<bundles_post_ra>
// kernel: tpu_custom_call.1
= control target key start
LH: loop header
LB: loop body
LE: loop exit
PB: predicated region body
PF: predicated region fallthrough
CT: control target
= control target key end

     0   :  { %v325_v2 = vmov 0   ;;  %s476_s0 = inlined_call_operand.vmem [shape: f32[128,1], index: 0, kind: input, shape index: {}]   ;;  %s477_s1 = inlined_call_operand.vmem [shape: f32[1,128], index: 1, kind: input, shape index: {}]   ;;  %s478_s2 = inlined_call_operand.vmem [shape: f32[128,128], index: 2, kind: input, shape index: {}]   ;;  %s479_s3 = inlined_call_operand.hbm [shape: f32[1,8,128], index: 3, kind: output, shape index: {}]  }
   0x1   :  { %v17_v0 = vld [vmem:[%s476_s0 + $0x10] sm:$0xff]  ;;  %v15_v1 = vld [vmem:[%s476_s0] sm:$0xff]  ;;  %300 = vset.pattern.permute.xlu1 %v325_v2  ;;  %299 = vset.pattern.permute.xlu0 %v325_v2  ;;  %v18_v3 = vld [vmem:[%s476_s0 + $0x18] sm:$0xff] }
   0x2   :  { %43 = vperm.xlu1 %300, %v17_v0   ;;  %33 = vperm.xlu0 %299, %v15_v1   ;;  %v16_v4 = vld [vmem:[%s476_s0 + $0x8] sm:$0xff] }
   0x6   :  { %48 = vperm.xlu1 %300, %v18_v3   ;;  %38 = vperm.xlu0 %299, %v16_v4  }
   0x7   :  { %8 = vsyncpa [#allocation3], 0  ;;  %v20_v5 = vld [vmem:[%s476_s0 + $0x28] sm:$0xff]  ;;  %v19_v6 = vld [vmem:[%s476_s0 + $0x20] sm:$0xff]  ;;  %s326_s22 = smov [#allocation2]  }
   0x8   :  { %v22_v7 = vld [vmem:[%s476_s0 + $0x38] sm:$0xff]  ;;  %v21_v8 = vld [vmem:[%s476_s0 + $0x30] sm:$0xff]  ;;  %v24_v9 = vld [vmem:[%s476_s0 + $0x48] sm:$0xff] }
   0x9   :  { %v23_v10 = vld [vmem:[%s476_s0 + $0x40] sm:$0xff]  ;;  %v26_v11 = vld [vmem:[%s476_s0 + $0x58] sm:$0xff]  ;;  %v25_v12 = vld [vmem:[%s476_s0 + $0x50] sm:$0xff] }
   0xa   :  { %58 = vperm.xlu1 %300, %v20_v5   ;;  %53 = vperm.xlu0 %299, %v19_v6   ;;  %v28_v13 = vld [vmem:[%s476_s0 + $0x68] sm:$0xff]  ;;  %v27_v14 = vld [vmem:[%s476_s0 + $0x60] sm:$0xff]  ;;  %v30_v15 = vld [vmem:[%s476_s0 + $0x78] sm:$0xff] }
   0xb   :  { %v29_v16 = vld [vmem:[%s476_s0 + $0x70] sm:$0xff]  ;;  %v398_v17 = vld [vmem:[%s477_s1] ss:$0 sm:$0xff]  ;;  %v139_v26 = vld [vmem:[%s478_s2 + $0x8] sm:$0xff]  ;;  %s276_s0 = sshll.u32 %s326_s22, 4  ;;  %s277_s0 = int_to_ptr.vmem [resolvable:$true] %s276_s0 }
   0xc   :  { %v138_v20 = vld [vmem:[%s478_s2] sm:$0xff]  ;;  %v140_v23 = vld [vmem:[%s478_s2 + $0x10] sm:$0xff]  ;;  %v141_v30 = vld [vmem:[%s478_s2 + $0x18] sm:$0xff]  ;;  %s301_s23 = scalar_lea.vmem %s277_s0, 128  ;;  %p306_p1 = scmp.lt.s32.totalorder %s277_s0, %s277_s0 }
   0xd   :  { %v142_v35 = vld [vmem:[%s478_s2 + $0x20] sm:$0xff]  ;;  %v143_v39 = vld [vmem:[%s478_s2 + $0x28] sm:$0xff]  ;;  %v144_v51 = vld [vmem:[%s478_s2 + $0x30] sm:$0xff]  ;;  %p302_p0 = scmp.ne.s32.totalorder %s277_s0, %s301_s23  ;;  %p307_p2 = scmp.lt.s32.totalorder %s301_s23, %s301_s23 }
   0xe   :  { %68 = vperm.xlu1 %300, %v22_v7   ;;  %63 = vperm.xlu0 %299, %v21_v8   ;;  %v145_v52 = vld [vmem:[%s478_s2 + $0x38] sm:$0xff]  ;;  %v146_v59 = vld [vmem:[%s478_s2 + $0x40] sm:$0xff]  ;;  %v147_v63 = vld [vmem:[%s478_s2 + $0x48] sm:$0xff] }
   0xf   :  { %p308_p3 = por %p307_p2, %p306_p1 }
  0x11   :  { %p309_p4 = pnand %p308_p3, %p302_p0 }
  0x12   :  { %78 = vperm.xlu1 %300, %v24_v9   ;;  %73 = vperm.xlu0 %299, %v23_v10  }
  0x16   :  { %88 = vperm.xlu1 %300, %v26_v11   ;;  %83 = vperm.xlu0 %299, %v25_v12   ;;  %v148_v11 = vld [vmem:[%s478_s2 + $0x50] sm:$0xff]  ;;  %v149_v12 = vld [vmem:[%s478_s2 + $0x58] sm:$0xff] }
  0x1a   :  { %98 = vperm.xlu1 %300, %v28_v13   ;;  %93 = vperm.xlu0 %299, %v27_v14  }
  0x1e   :  { %108 = vperm.xlu1 %300, %v30_v15   ;;  %103 = vperm.xlu0 %299, %v29_v16  }
  0x81   :  { %v44_v18 = vpop.permute.xlu1 %43  ;;  %v34_v19 = vpop.permute.xlu0 %33 }
  0x82   :  { %v122_v21 = vsub.f32 %v34_v19, %v398_v17  ;;  %v124_v22 = vsub.f32 %v44_v18, %v398_v17 }
  0x84   :  { %v154_v24 = vadd.f32 %v138_v20, %v122_v21  ;;  %v156_v31 = vadd.f32 %v140_v23, %v124_v22  ;;  %v150_v20 = vld [vmem:[%s478_s2 + $0x60] sm:$0xff] }
  0x85   :  { %v49_v25 = vpop.permute.xlu1 %48  ;;  %v39_v27 = vpop.permute.xlu0 %38 }
  0x86   :  { %v125_v28 = vsub.f32 %v49_v25, %v398_v17  ;;  %v123_v29 = vsub.f32 %v39_v27, %v398_v17  ;;  %v170_v33 = vmax.f32 %v154_v24, 0.0  ;;  %v172_v42 = vmax.f32 %v156_v31, 0.0 }
  0x88   :  { %v155_v32 = vadd.f32 %v139_v26, %v123_v29  ;;  %v157_v37 = vadd.f32 %v141_v30, %v125_v28  ;;  %v151_v26 = vld [vmem:[%s478_s2 + $0x68] sm:$0xff] }
  0x89   :  { %v59_v34 = vpop.permute.xlu1 %58  ;;  %v54_v36 = vpop.permute.xlu0 %53 }
  0x8a   :  { %v171_v38 = vmax.f32 %v155_v32, 0.0  ;;  %v127_v40 = vsub.f32 %v59_v34, %v398_v17  ;;  %v126_v41 = vsub.f32 %v54_v36, %v398_v17  ;;  %v173_v48 = vmax.f32 %v157_v37, 0.0  ;;  %v152_v36 = vld [vmem:[%s478_s2 + $0x70] sm:$0xff]  ;;  %v153_v37 = vld [vmem:[%s478_s2 + $0x78] sm:$0xff] }
  0x8c   :  { %v186_v43 = vadd.f32 %v171_v38, %v170_v33  ;;  %v158_v44 = vadd.f32 %v142_v35, %v126_v41  ;;  %v159_v45 = vadd.f32 %v143_v39, %v127_v40 }
  0x8d   :  { %v69_v46 = vpop.permute.xlu1 %68  ;;  %v64_v47 = vpop.permute.xlu0 %63 }
  0x8e   :  { %v187_v49 = vadd.f32 %v186_v43, %v172_v42  ;;  %v129_v50 = vsub.f32 %v69_v46, %v398_v17  ;;  %v128_v53 = vsub.f32 %v64_v47, %v398_v17  ;;  %v174_v55 = vmax.f32 %v158_v44, 0.0 }
  0x8f   :  { %v175_v56 = vmax.f32 %v159_v45, 0.0 }
  0x90   :  { %v188_v54 = vadd.f32 %v187_v49, %v173_v48  ;;  %v160_v57 = vadd.f32 %v144_v51, %v128_v53  ;;  %v161_v62 = vadd.f32 %v145_v52, %v129_v50 }
  0x91   :  { %v79_v58 = vpop.permute.xlu1 %78  ;;  %v74_v60 = vpop.permute.xlu0 %73 }
  0x92   :  { %v189_v61 = vadd.f32 %v188_v54, %v174_v55  ;;  %v131_v0 = vsub.f32 %v79_v58, %v398_v17  ;;  %v130_v1 = vsub.f32 %v74_v60, %v398_v17  ;;  %v176_v3 = vmax.f32 %v160_v57, 0.0 }
  0x93   :  { %v177_v8 = vmax.f32 %v161_v62, 0.0 }
  0x94   :  { %v190_v2 = vadd.f32 %v189_v61, %v175_v56  ;;  %v162_v4 = vadd.f32 %v146_v59, %v130_v1  ;;  %v163_v5 = vadd.f32 %v147_v63, %v131_v0 }
  0x95   :  { %v89_v6 = vpop.permute.xlu1 %88  ;;  %v84_v7 = vpop.permute.xlu0 %83 }
  0x96   :  { %v191_v9 = vadd.f32 %v190_v2, %v176_v3  ;;  %v133_v10 = vsub.f32 %v89_v6, %v398_v17  ;;  %v132_v13 = vsub.f32 %v84_v7, %v398_v17  ;;  %v178_v15 = vmax.f32 %v162_v4, 0.0 }
  0x97   :  { %v179_v16 = vmax.f32 %v163_v5, 0.0 }
  0x98   :  { %v192_v14 = vadd.f32 %v191_v9, %v177_v8  ;;  %v164_v18 = vadd.f32 %v148_v11, %v132_v13  ;;  %v165_v23 = vadd.f32 %v149_v12, %v133_v10 }
  0x99   :  { %v99_v19 = vpop.permute.xlu1 %98  ;;  %v94_v21 = vpop.permute.xlu0 %93 }
  0x9a   :  { %v193_v22 = vadd.f32 %v192_v14, %v178_v15  ;;  %v135_v24 = vsub.f32 %v99_v19, %v398_v17  ;;  %v134_v25 = vsub.f32 %v94_v21, %v398_v17  ;;  %v180_v28 = vmax.f32 %v164_v18, 0.0 }
  0x9b   :  { %v181_v32 = vmax.f32 %v165_v23, 0.0 }
  0x9c   :  { %v194_v27 = vadd.f32 %v193_v22, %v179_v16  ;;  %v166_v29 = vadd.f32 %v150_v20, %v134_v25  ;;  %v167_v34 = vadd.f32 %v151_v26, %v135_v24 }
  0x9d   :  { %v109_v30 = vpop.permute.xlu1 %108  ;;  %v104_v31 = vpop.permute.xlu0 %103 }
  0x9e   :  { %v195_v33 = vadd.f32 %v194_v27, %v180_v28  ;;  %v137_v35 = vsub.f32 %v109_v30, %v398_v17  ;;  %v136_v38 = vsub.f32 %v104_v31, %v398_v17  ;;  %v182_v40 = vmax.f32 %v166_v29, 0.0 }
  0x9f   :  { %v183_v42 = vmax.f32 %v167_v34, 0.0 }
  0xa0   :  { %v196_v39 = vadd.f32 %v195_v33, %v181_v32  ;;  %v168_v41 = vadd.f32 %v152_v36, %v136_v38  ;;  %v169_v44 = vadd.f32 %v153_v37, %v137_v35 }
  0xa2   :  { %v197_v43 = vadd.f32 %v196_v39, %v182_v40  ;;  %v184_v45 = vmax.f32 %v168_v41, 0.0  ;;  %v185_v47 = vmax.f32 %v169_v44, 0.0 }
  0xa4   :  { %v198_v46 = vadd.f32 %v197_v43, %v183_v42 }
  0xa6   :  { %v199_v48 = vadd.f32 %v198_v46, %v184_v45 }
  0xa8   :  { %v200_v49 = vadd.f32 %v199_v48, %v185_v47 }
  0xaa   :  { %269 = vst [vmem:[#allocation2] sm:$0xff] %v200_v49 }
  0xab   :  { %312 = shalt.err (!%p309_p4)
}
  0xac   :  { %s313_s24 = scalar_lea.hbm %s479_s3, 128 }
  0xad   :  { %p314_p5 = scmp.ne.s32.totalorder %s479_s3, %s313_s24  ;;  %p317_p6 = scmp.lt.u32.totalorder %s313_s24, %s479_s3 }
  0xaf   :  { %p319_p7 = pnand %p317_p6, %p314_p5 }
  0xb1   :  { %322 = shalt.err (!%p319_p7)
}
  0xb2   :  { %279 = dma.vmem_to_hbm [thread:$0]  %s277_s0, 128, %s479_s3, [#allocation3]  }
  0xb3   :  { %323 = dma.done.wait [#allocation3], 128  }
  0xb4   :  { %324 = vsyncadd [#allocation3], 4294967168 }
  0xb5   :  { %283 = vsyncpa [#allocation3], 1 }

</bundles_post_ra>
